<compile_context>
chip_gen: v7x
topology: tpu7x:2x2x1
jax: 0.10.0
libtpu: 0.0.40
codegen_flags: <defaults>
</compile_context>

<pallas_src>
import jax
import jax.numpy as jnp
from jax.experimental import pallas as pl
from jax.experimental.pallas import tpu as pltpu

_LANE_WIDTH = 1024  # lane-dense last dim (multiple of 128)


def _sine_zero_one_kernel(a_ref, b_ref, x_ref, o_ref):
    # a_ref, b_ref: (1,) f32 scalars in SMEM; x_ref / o_ref: (tr, W) VMEM tiles.
    a = a_ref[0]
    b = b_ref[0]
    # Cast to f32 inside the kernel (VPU work hidden under the DMA); the
    # native dtype is what streams through HBM.
    x = x_ref[...].astype(jnp.float32)
    y = jnp.maximum(jnp.sin(a + b * x), 0.0)
    o_ref[...] = y.astype(o_ref.dtype)


def _tpu_generation_params():
    """Pick (block_bytes, vmem_limit_bytes) for the local TPU generation."""
    try:
        kind = jax.devices()[0].device_kind.lower()
    except Exception:
        kind = ""
    if "7" in kind:
        # v7x: bigger blocks to amortize per-step overhead at 3.2 TB/s HBM.
        # 4 * 6 MiB = 24 MiB double-buffered in+out; raise scoped VMEM to 40 MiB
        # (physical is 64 MiB) for headroom.
        return 6 * 1024 * 1024, 40 * 1024 * 1024
    if "v6" in kind or "6e" in kind or "6p" in kind:
        # v6e: 4 MiB blocks (16 MiB total) stay under the 32 MiB scoped default.
        return 4 * 1024 * 1024, None
    # v5e and older / unknown: 2 MiB blocks (8 MiB total) under the 16 MiB default.
    return 2 * 1024 * 1024, None


def sine_zero_one(x, a, b, *, block_bytes=None):
    """Computes relu(sin(a + b * x)) elementwise with a Pallas TPU kernel.

    x: any-shape array (e.g. NCHW). a, b: shape (1,) parameters.
    """
    orig_shape = x.shape
    orig_dtype = x.dtype

    auto_block, vmem_limit = _tpu_generation_params()
    if block_bytes is None:
        block_bytes = auto_block

    # Streaming dtypes: float inputs stream natively (bf16 halves HBM traffic),
    # integer inputs stream natively and get cast to f32 in-kernel.  Output
    # matches PyTorch promotion: float in -> same float out; int/bool -> f32.
    if jnp.issubdtype(orig_dtype, jnp.floating):
        in_dtype = orig_dtype if jnp.dtype(orig_dtype).itemsize <= 4 else jnp.float32
        out_dtype = in_dtype
    elif jnp.issubdtype(orig_dtype, jnp.integer):
        in_dtype = orig_dtype if jnp.dtype(orig_dtype).itemsize <= 4 else jnp.int32
        out_dtype = jnp.float32
    else:  # bool, etc.
        in_dtype = jnp.float32
        out_dtype = jnp.float32

    flat = x.reshape(-1)
    if flat.dtype != in_dtype:
        flat = flat.astype(in_dtype)

    n = flat.shape[0]
    w = _LANE_WIDTH
    rows = -(-n // w)
    padded_n = rows * w
    padded = padded_n != n
    if padded:
        # The pad/reshape producer is fused into the pallas_call input DMA via
        # allow_input_fusion below, so this does not cost a separate HBM pass.
        flat = jnp.pad(flat, (0, padded_n - n))
    x2d = flat.reshape(rows, w)

    in_item = jnp.dtype(in_dtype).itemsize
    out_item = jnp.dtype(out_dtype).itemsize
    # Sublane multiple for the narrowest streamed dtype: 8 for 32-bit,
    # 16 for 16-bit, 32 for 8-bit -> packed tiles never need masked stores.
    sub = max(8, 32 // min(in_item, out_item))

    rows_per_block = block_bytes // (w * max(in_item, out_item))
    tr = max(sub, (rows_per_block // sub) * sub)
    if rows <= tr:
        tr = rows  # single full-extent block (always legal)
    grid = (-(-rows // tr),)

    cost = pl.CostEstimate(
        flops=3 * padded_n,            # mul + add + relu-max per element
        transcendentals=padded_n,      # sin
        bytes_accessed=padded_n * (in_item + out_item),
    )

    out2d = pl.pallas_call(
        _sine_zero_one_kernel,
        out_shape=jax.ShapeDtypeStruct((rows, w), out_dtype),
        grid_spec=pltpu.PrefetchScalarGridSpec(
            num_scalar_prefetch=0,
            grid=grid,
            in_specs=[
                pl.BlockSpec(memory_space=pltpu.SMEM),   # a
                pl.BlockSpec(memory_space=pltpu.SMEM),   # b
                pl.BlockSpec((tr, w), lambda i: (i, 0)),
            ],
            out_specs=pl.BlockSpec((tr, w), lambda i: (i, 0)),
        ),
        compiler_params=pltpu.CompilerParams(
            dimension_semantics=("parallel",),            # megacore split on v7x
            allow_input_fusion=[False, False, True],      # fuse pad/reshape into input DMA
            vmem_limit_bytes=vmem_limit,
        ),
        cost_estimate=cost,
    )(a.reshape(-1).astype(jnp.float32),
      b.reshape(-1).astype(jnp.float32),
      x2d)

    out_flat = out2d.reshape(-1)
    if padded:
        out_flat = out_flat[:n]
    return out_flat.reshape(orig_shape)


if __name__ == "__main__":
    key = jax.random.PRNGKey(0)
    x = jax.random.normal(key, (2, 4, 16, 16), dtype=jnp.float32)

    # Parameter init matching the PyTorch module's __init__.
    a = jnp.array([0.2], dtype=jnp.float32)
    b = jnp.array([1.4], dtype=jnp.float32)

    out = sine_zero_one(x, a, b)
    out = jax.block_until_ready(out)

    # Reference check in plain JAX: relu(sin(a + b*x)).
    ref = jnp.maximum(jnp.sin(a[0] + b[0] * x), 0.0)
    assert out.shape == x.shape
    assert out.dtype == x.dtype
    assert jnp.allclose(out, ref, atol=1e-5, rtol=1e-5)

    print("KERNEL_OK")
</pallas_src>

<mosaic_0001>
module attributes {stable_mosaic.version = 11 : i64} {
  func.func @_sine_zero_one_kernel(%arg0: i32, %arg1: memref<1xf32, #tpu.memory_space<smem>>, %arg2: memref<1xf32, #tpu.memory_space<smem>>, %arg3: memref<2x1024xf32, #tpu.memory_space<vmem>>, %arg4: memref<2x1024xf32, #tpu.memory_space<vmem>>) attributes {dimension_semantics = [#tpu.dimension_semantics<parallel>], iteration_bounds = array<i64: 1>, scalar_prefetch = 0 : i64, scratch_operands = 0 : i64, tpu.core_type = #tpu.core_type<tc>, window_params = [{transform_indices = @transform_0, window_bounds = array<i64: 1>}, {transform_indices = @transform_1, window_bounds = array<i64: 1>}, {transform_indices = @transform_2, window_bounds = array<i64: 2, 1024>}, {transform_indices = @transform_3, window_bounds = array<i64: 2, 1024>}]} {
    %c0 = arith.constant 0 : index
    %0 = memref.load %arg1[%c0] : memref<1xf32, #tpu.memory_space<smem>>
    %c0_0 = arith.constant 0 : index
    %1 = memref.load %arg2[%c0_0] : memref<1xf32, #tpu.memory_space<smem>>
    %c0_1 = arith.constant 0 : index
    %c0_2 = arith.constant 0 : index
    %2 = vector.load %arg3[%c0_1, %c0_2] : memref<2x1024xf32, #tpu.memory_space<vmem>>, vector<2x1024xf32>
    %3 = vector.broadcast %1 : f32 to vector<2x1024xf32>
    %4 = arith.mulf %3, %2 : vector<2x1024xf32>
    %5 = vector.broadcast %0 : f32 to vector<2x1024xf32>
    %6 = arith.addf %5, %4 : vector<2x1024xf32>
    %7 = math.sin %6 : vector<2x1024xf32>
    %cst = arith.constant 0.000000e+00 : f32
    %8 = vector.broadcast %cst : f32 to vector<2x1024xf32>
    %9 = arith.maximumf %7, %8 : vector<2x1024xf32>
    %c0_3 = arith.constant 0 : index
    %c0_4 = arith.constant 0 : index
    %10 = vector.load %arg4[%c0_3, %c0_4] : memref<2x1024xf32, #tpu.memory_space<vmem>>, vector<2x1024xf32>
    tpu.vector_store %arg4[%c0_3, %c0_4], %9 {strides = array<i32>} : memref<2x1024xf32, #tpu.memory_space<vmem>>, vector<2x1024xf32>,
    return
  }
  func.func @transform_0(%arg0: i32) -> i32 {
    %c0_i32 = arith.constant 0 : i32
    %c0_i32_0 = arith.constant 0 : i32
    return %c0_i32 : i32
  }
  func.func @transform_1(%arg0: i32) -> i32 {
    %c0_i32 = arith.constant 0 : i32
    %c0_i32_0 = arith.constant 0 : i32
    return %c0_i32 : i32
  }
  func.func @transform_2(%arg0: i32) -> (i32, i32) {
    %c0_i32 = arith.constant 0 : i32
    %c0_i32_0 = arith.constant 0 : i32
    return %arg0, %c0_i32 : i32, i32
  }
  func.func @transform_3(%arg0: i32) -> (i32, i32) {
    %c0_i32 = arith.constant 0 : i32
    %c0_i32_0 = arith.constant 0 : i32
    return %arg0, %c0_i32 : i32, i32
  }
}

</mosaic_0001>

<bundles_post_ra>
// kernel: tpu_custom_call.1
= control target key start
LH: loop header
LB: loop body
LE: loop exit
PB: predicated region body
PF: predicated region fallthrough
CT: control target
= control target key end

     0   :  { %10 = vsyncpa [#allocation5], 0  ;;  %s474_s0 = inlined_call_operand.<no memory space> [shape: f32[1], index: 0, kind: input, shape index: {}]   ;;  %s475_s1 = inlined_call_operand.<no memory space> [shape: f32[1], index: 1, kind: input, shape index: {}]   ;;  %s476_s2 = inlined_call_operand.hbm [shape: f32[2,1024], index: 2, kind: input, shape index: {}]   ;;  %s477_s3 = inlined_call_operand.hbm [shape: f32[2,1024], index: 3, kind: output, shape index: {}]  }
   0x1   :  { %11 = vsyncpa [#allocation6], 0  ;;  %s346_s12 = smov [#allocation4]   ;;  %s298_s16 = scalar_lea.hbm %s476_s2, 256 }
   0x2   :  { %s22_s13 = sshll.u32 %s346_s12, 4  ;;  %p299_p0 = scmp.ne.s32.totalorder %s476_s2, %s298_s16  ;;  %s23_s13 = int_to_ptr.vmem [resolvable:$true] %s22_s13 }
   0x3   :  { %p302_p1 = scmp.lt.u32.totalorder %s298_s16, %s476_s2 }
   0x5   :  { %p304_p2 = pnand %p302_p1, %p299_p0 }
   0x7   :  { %307 = shalt.err (!%p304_p2)
}
   0x8   :  { %s308_s21 = scalar_lea.vmem %s23_s13, 256  ;;  %p313_p4 = scmp.lt.s32.totalorder %s23_s13, %s23_s13 }
   0x9   :  { %p309_p3 = scmp.ne.s32.totalorder %s23_s13, %s308_s21  ;;  %p314_p5 = scmp.lt.s32.totalorder %s308_s21, %s308_s21 }
   0xb   :  { %p315_p6 = por %p314_p5, %p313_p4 }
   0xd   :  { %p316_p7 = pnand %p315_p6, %p309_p3 }
   0xf   :  { %319 = shalt.err (!%p316_p7)
}
  0x10   :  { %25 = dma.hbm_to_vmem [thread:$0]  %s476_s2, 256, %s23_s13, [#allocation5]  }
  0x11   :  { %342 = dma.done.wait [#allocation5], 256  }
  0x12   :  { %343 = vsyncadd [#allocation5], 4294967040  ;;  %v33_v0 = vstv %s475_s1  ;;  %v31_v1 = vld [vmem:[#allocation4] sm:$0xff]  ;;  %v36_v2 = vstv %s474_s0  ;;  %v32_v3 = vld [vmem:[#allocation4 + $0x8] sm:$0xff]  ;;  %v347_v30 = vmov 683565275  }
  0x13   :  { %v34_v4 = vmul.f32 %v33_v0, %v31_v1  ;;  %v35_v5 = vmul.f32 %v33_v0, %v32_v3  ;;  %v348_v32 = vmov 2475754826   ;;  %v349_v34 = vmov 2131351028   ;;  %s353_s0 = smov [#allocation7]  }
  0x14   :  { %v350_v36 = vmov 2102212464   ;;  %v351_v38 = vmov 920167782   ;;  %v352_v46 = vmov 1326507024  }
  0x15   :  { %v392_v6 = vadd.f32 %v36_v2, %v34_v4  ;;  %v394_v7 = vadd.f32 %v36_v2, %v35_v5  ;;  %s257_s1 = sshll.u32 %s353_s0, 4  ;;  %s258_s1 = int_to_ptr.vmem [resolvable:$true] %s257_s1 }
  0x16   :  { %s320_s2 = scalar_lea.vmem %s258_s1, 256  ;;  %p325_p9 = scmp.lt.s32.totalorder %s258_s1, %s258_s1 }
  0x17   :  { %v39_v8 = vand.u32 2147483647, %v392_v6  ;;  %v42_v9 = vand.u32 2139095040, %v392_v6  ;;  %v143_v10 = vand.u32 2147483647, %v394_v7  ;;  %v146_v11 = vand.u32 2139095040, %v394_v7  ;;  %p321_p8 = scmp.ne.s32.totalorder %s258_s1, %s320_s2  ;;  %p326_p10 = scmp.lt.s32.totalorder %s320_s2, %s320_s2 }
  0x18   :  { %vm41_vm14 = vcmp.lt.s32.totalorder %v392_v6, 0 }
  0x19   :  { %v43_v12 = vshrl.u32 %v42_v9, 23  ;;  %v46_v13 = vand.u32 8388607, %v39_v8  ;;  %v147_v14 = vshrl.u32 %v146_v11, 23  ;;  %v150_v15 = vand.u32 8388607, %v143_v10  ;;  %p327_p11 = por %p326_p10, %p325_p9 }
  0x1a   :  { %vm40_vm15 = vcmp.le.f32.partialorder %v39_v8, 0.7853982 }
  0x1b   :  { %v266_v16 = vadd.s32 4294967169, %v43_v12  ;;  %v270_v17 = vadd.s32 4294967169, %v147_v14  ;;  %v47_v19 = vor.u32 8388608, %v46_v13  ;;  %v151_v20 = vor.u32 8388608, %v150_v15  ;;  %p328_p12 = pnand %p327_p11, %p321_p8 }
  0x1d   :  { %v49_v18 = vadd.s32 1, %v266_v16  ;;  %v153_v21 = vadd.s32 1, %v270_v17  ;;  %v404_v26 = vshll.u32 %v47_v19, 8  ;;  %v406_v28 = vshll.u32 %v151_v20, 8 }
  0x1f   :  { %vm50_vm0 = vcmp.gt.s32.totalorder %v49_v18, 0  ;;  %vm154_vm1 = vcmp.gt.s32.totalorder %v153_v21, 0 }
  0x20   :  { %v51_v22 = vsel %vm50_vm0, %v49_v18, 0  ;;  %v155_v25 = vsel %vm154_vm1, %v153_v21, 0  ;;  %vm145_vm0 = vcmp.lt.s32.totalorder %v394_v7, 0  ;;  %vm144_vm1 = vcmp.le.f32.partialorder %v143_v10, 0.7853982 }
  0x21   :  { %v52_v23 = vshrl.u32 %v51_v22, 5  ;;  %v53_v24 = vand.u32 31, %v51_v22  ;;  %v157_v27 = vand.u32 31, %v155_v25  ;;  %v408_v40 = vshrl.u32 %v155_v25, 5 }
  0x23   :  { %v54_v29 = vsub.s32 32, %v53_v24  ;;  %v56_v31 = vshll.u32 %v347_v30, %v53_v24  ;;  %v59_v33 = vshll.u32 %v348_v32, %v53_v24  ;;  %v62_v35 = vshll.u32 %v349_v34, %v53_v24 }
  0x24   :  { %v65_v37 = vshll.u32 %v350_v36, %v53_v24  ;;  %v68_v39 = vshll.u32 %v351_v38, %v53_v24  ;;  %vm71_vm2 = vcmp.lt.s32.totalorder %v52_v23, 1  ;;  %vm72_vm3 = vcmp.lt.s32.totalorder %v52_v23, 2 }
  0x25   :  { %v55_v41 = vshrl.u32 %v347_v30, %v54_v29  ;;  %v57_v42 = vshrl.u32 %v348_v32, %v54_v29  ;;  %v60_v43 = vshrl.u32 %v349_v34, %v54_v29  ;;  %v63_v44 = vshrl.u32 %v350_v36, %v54_v29 }
  0x26   :  { %v66_v45 = vshrl.u32 %v351_v38, %v54_v29  ;;  %v69_v47 = vshrl.u32 %v352_v46, %v54_v29  ;;  %vm74_vm4 = vcmp.lt.s32.totalorder %v52_v23, 4  ;;  %v158_v51 = vsub.s32 32, %v157_v27 }
  0x27   :  { %v58_v48 = vor.u32 %v57_v42, %v56_v31  ;;  %v61_v49 = vor.u32 %v60_v43, %v59_v33  ;;  %v64_v50 = vor.u32 %v63_v44, %v62_v35  ;;  %vm73_vm5 = vcmp.lt.s32.totalorder %v52_v23, 3 }
  0x28   :  { %v67_v52 = vor.u32 %v66_v45, %v65_v37  ;;  %v70_v53 = vor.u32 %v69_v47, %v68_v39  ;;  %v160_v54 = vshll.u32 %v347_v30, %v157_v27  ;;  %v163_v62 = vshll.u32 %v348_v32, %v157_v27 }
  0x29   :  { %v75_v55 = vsel %vm71_vm2, %v55_v41, %v58_v48  ;;  %v76_v56 = vsel %vm74_vm4, %v64_v50, 2102212464  ;;  %v79_v57 = vsel %vm71_vm2, %v58_v48, %v61_v49  ;;  %v83_v58 = vsel %vm71_vm2, %v61_v49, %v64_v50 }
  0x2a   :  { %v77_v59 = vsel %vm73_vm5, %v61_v49, %v76_v56  ;;  %v80_v60 = vsel %vm74_vm4, %v67_v52, 920167782  ;;  %v84_v61 = vsel %vm74_vm4, %v70_v53, 1326507024  ;;  %v159_v1 = vshrl.u32 %v347_v30, %v158_v51 }
  0x2b   :  { %v81_v63 = vsel %vm73_vm5, %v64_v50, %v80_v60  ;;  %v85_v0 = vsel %vm73_vm5, %v67_v52, %v84_v61  ;;  %v161_v2 = vshrl.u32 %v348_v32, %v158_v51  ;;  %v78_v3 = vsel %vm72_vm3, %v75_v55, %v77_v59 }
  0x2c   :  { %v82_v4 = vsel %vm72_vm3, %v79_v57, %v81_v63  ;;  %v86_v5 = vsel %vm72_vm3, %v83_v58, %v85_v0  ;;  %v164_v9 = vshrl.u32 %v349_v34, %v158_v51  ;;  %v166_v17 = vshll.u32 %v349_v34, %v157_v27 }
  0x2d   :  { %v417_v11 = vmul.u32.u64.low %v404_v26, %v86_v5  ;;  %v418_v12 = vmul.u32.u64.high %v404_v26, %v86_v5, %v417_v11  ;;  %v421_v13 = vmul.u32.u64.low %v404_v26, %v82_v4  ;;  %v422_v14 = vmul.u32.u64.high %v404_v26, %v82_v4, %v421_v13 }
  0x2e   :  { %v162_v15 = vor.u32 %v161_v2, %v160_v54  ;;  %v165_v16 = vor.u32 %v164_v9, %v163_v62  ;;  %v167_v18 = vshrl.u32 %v350_v36, %v158_v51  ;;  %v169_v19 = vshll.u32 %v350_v36, %v157_v27 }
  0x2f   :  { %v170_v20 = vshrl.u32 %v351_v38, %v158_v51  ;;  %v172_v21 = vshll.u32 %v351_v38, %v157_v27  ;;  %v173_v22 = vshrl.u32 %v352_v46, %v158_v51  ;;  %v94_v23 = vmul.u32 %v404_v26, %v78_v3 }
  0x30   :  { %v168_v24 = vor.u32 %v167_v18, %v166_v17  ;;  %vm175_vm6 = vcmp.lt.s32.totalorder %v408_v40, 1  ;;  %vm176_vm7 = vcmp.lt.s32.totalorder %v408_v40, 2  ;;  %vm96_vm8 = vc.u32 %v418_v12, %v421_v13 }
  0x31   :  { %v97_v25 = vadd.s32 1, %v422_v14  ;;  %v171_v29 = vor.u32 %v170_v20, %v169_v19  ;;  %vm177_vm9 = vcmp.lt.s32.totalorder %v408_v40, 3  ;;  %v174_v30 = vor.u32 %v173_v22, %v172_v21 }
  0x32   :  { %vm178_vm10 = vcmp.lt.s32.totalorder %v408_v40, 4  ;;  %v179_v31 = vsel %vm175_vm6, %v159_v1, %v162_v15  ;;  %v183_v27 = vsel %vm175_vm6, %v162_v15, %v165_v16  ;;  %v187_v34 = vsel %vm175_vm6, %v165_v16, %v168_v24 }
  0x33   :  { %v98_v32 = vsel %vm96_vm8, %v97_v25, %v422_v14  ;;  %v180_v26 = vsel %vm178_vm10, %v168_v24, 2102212464  ;;  %v184_v33 = vsel %vm178_vm10, %v171_v29, 920167782  ;;  %v188_v38 = vsel %vm178_vm10, %v174_v30, 1326507024 }
  0x34   :  { %v99_v35 = vadd.s32 %v98_v32, %v94_v23  ;;  %v181_v36 = vsel %vm177_vm9, %v165_v16, %v180_v26  ;;  %v185_v37 = vsel %vm177_vm9, %v168_v24, %v184_v33  ;;  %v189_v42 = vsel %vm177_vm9, %v171_v29, %v188_v38 }
  0x35   :  { %v182_v39 = vsel %vm176_vm7, %v179_v31, %v181_v36  ;;  %v186_v41 = vsel %vm176_vm7, %v183_v27, %v185_v37  ;;  %v190_v44 = vsel %vm176_vm7, %v187_v34, %v189_v42  ;;  %v95_v63 = vadd.s32 %v421_v13, %v418_v12 }
  0x36   :  { %v100_v43 = vadd.s32 536870912, %v99_v35  ;;  %v439_v45 = vmul.u32.u64.low %v406_v28, %v186_v41  ;;  %v440_v46 = vmul.u32.u64.high %v406_v28, %v186_v41, %v439_v45  ;;  %v198_v50 = vmul.u32 %v406_v28, %v182_v39 }
  0x37   :  { %v443_v47 = vmul.u32.u64.low %v406_v28, %v190_v44  ;;  %v444_v48 = vmul.u32.u64.high %v406_v28, %v190_v44, %v443_v47  ;;  %vm131_vm5 = vweird.f32 %v392_v6  ;;  %vm235_vm9 = vweird.f32 %v394_v7 }
  0x38   :  { %v101_v49 = vshrl.u32 %v100_v43, 30  ;;  %v201_v52 = vadd.s32 1, %v440_v46 }
  0x39   :  { %vm200_vm11 = vc.u32 %v444_v48, %v439_v45  ;;  %v199_v19 = vadd.s32 %v439_v45, %v444_v48 }
  0x3a   :  { %v102_v51 = vshll.u32 %v101_v49, 30  ;;  %v202_v40 = vsel %vm200_vm11, %v201_v52, %v440_v46  ;;  %v125_v12 = vsub.s32 4, %v101_v49 }
  0x3b   :  { %v203_v54 = vadd.s32 %v202_v40, %v198_v50 }
  0x3c   :  { %v103_v53 = vsub.s32 %v99_v35, %v102_v51  ;;  %v126_v31 = vsel %vm41_vm14, %v125_v12, %v101_v49 }
  0x3d   :  { %v204_v56 = vadd.s32 536870912, %v203_v54  ;;  %v128_v34 = vsel %vm40_vm15, 0, %v126_v31 }
  0x3e   :  { %v105_v55 = vsub.s32 0, %v103_v53  ;;  %v132_v39 = vadd.s32 3, %v128_v34 }
  0x3f   :  { %v205_v58 = vshrl.u32 %v204_v56, 30 }
  0x40   :  { %v267_v57 = vmin.u32 %v105_v55, %v103_v53  ;;  %v133_v43 = vand.u32 3, %v132_v39 }
  0x41   :  { %v206_v60 = vshll.u32 %v205_v58, 30  ;;  %v229_v38 = vsub.s32 4, %v205_v58 }
  0x42   :  { %v107_v59 = vclz %v267_v57  ;;  %vm138_vm2 = vcmp.eq.s32.totalorder %v133_v43, 2  ;;  %vm135_vm3 = vcmp.eq.s32.totalorder %v133_v43, 0  ;;  %vm134_vm4 = vcmp.lt.s32.totalorder %v133_v43, 2 }
  0x43   :  { %v207_v62 = vsub.s32 %v203_v54, %v206_v60  ;;  %v230_v42 = vsel %vm145_vm0, %v229_v38, %v205_v58 }
  0x44   :  { %v268_v61 = vadd.s32 4294967294, %v107_v59  ;;  %v232_v46 = vsel %vm144_vm1, 0, %v230_v42 }
  0x45   :  { %v209_v0 = vsub.s32 0, %v207_v62  ;;  %v236_v50 = vadd.s32 3, %v232_v46 }
  0x46   :  { %vm269_vm12 = vcmp.lt.s32.totalorder %v268_v61, 0 }
  0x47   :  { %v110_v28 = vsel %vm269_vm12, 0, %v268_v61  ;;  %v271_v4 = vmin.u32 %v209_v0, %v207_v62  ;;  %v237_v40 = vand.u32 3, %v236_v50 }
  0x48   :  { %v111_v1 = vsub.s32 32, %v110_v28  ;;  %v112_v2 = vshll.u32 %v103_v53, %v110_v28  ;;  %v115_v3 = vsub.s32 4294967266, %v110_v28 }
  0x49   :  { %v211_v11 = vclz %v271_v4  ;;  %vm242_vm6 = vcmp.eq.s32.totalorder %v237_v40, 2  ;;  %vm239_vm7 = vcmp.eq.s32.totalorder %v237_v40, 0  ;;  %vm238_vm8 = vcmp.lt.s32.totalorder %v237_v40, 2 }
  0x4a   :  { %v113_v5 = vshrl.u32 %v95_v63, %v111_v1  ;;  %v116_v9 = vadd.s32 127, %v115_v3 }
  0x4b   :  { %v272_v16 = vadd.s32 4294967294, %v211_v11 }
  0x4c   :  { %v114_v14 = vor.u32 %v113_v5, %v112_v2  ;;  %v117_v15 = vshll.u32 %v116_v9, 23 }
  0x4d   :  { %vm273_vm13 = vcmp.lt.s32.totalorder %v272_v16, 0 }
  0x4e   :  { %v118_v17 = vor.u32 4788187, %v117_v15  ;;  %v121_v18 = vcvt.s32.f32 %v114_v14  ;;  %v214_v13 = vsel %vm273_vm13, 0, %v272_v16 }
  0x4f   :  { %v215_v21 = vsub.s32 32, %v214_v13  ;;  %v216_v22 = vshll.u32 %v207_v62, %v214_v13  ;;  %v219_v23 = vsub.s32 4294967266, %v214_v13 }
  0x50   :  { %v119_v20 = vand.u32 2147483647, %v118_v17 }
  0x51   :  { %v217_v25 = vshrl.u32 %v199_v19, %v215_v21  ;;  %v220_v29 = vadd.s32 127, %v219_v23 }
  0x52   :  { %v122_v24 = vmul.f32 %v121_v18, %v119_v20 }
  0x53   :  { %v218_v27 = vor.u32 %v217_v25, %v216_v22  ;;  %v221_v32 = vshll.u32 %v220_v29, 23 }
  0x54   :  { %v123_v30 = vxor.u32 2147483648, %v122_v24 }
  0x55   :  { %v222_v35 = vor.u32 4788187, %v221_v32  ;;  %v225_v36 = vcvt.s32.f32 %v218_v27 }
  0x56   :  { %v124_v26 = vsel %vm41_vm14, %v123_v30, %v122_v24 }
  0x57   :  { %v127_v33 = vsel %vm40_vm15, %v392_v6, %v124_v26  ;;  %v223_v37 = vand.u32 2147483647, %v222_v35 }
  0x58   :  { %290 = vcosq.f32 %v127_v33 }
  0x59   :  { %292 = vsinq.f32 %v127_v33  ;;  %v226_v41 = vmul.f32 %v225_v36, %v223_v37 }
  0x5b   :  { %v227_v8 = vxor.u32 2147483648, %v226_v41 }
  0x5d   :  { %v228_v44 = vsel %vm145_vm0, %v227_v8, %v226_v41 }
  0x5e   :  { %v231_v45 = vsel %vm144_vm1, %v394_v7, %v228_v44 }
  0x5f   :  { %294 = vcosq.f32 %v231_v45 }
  0x60   :  { %296 = vsinq.f32 %v231_v45 }
  0x62   :  { %v291_v47 = vpop.eup %290 }
  0x63   :  { %v293_v48 = vpop.eup %292  ;;  %v139_v49 = vxor.u32 2147483648, %v291_v47 }
  0x64   :  { %v136_v51 = vxor.u32 2147483648, %v293_v48 }
  0x65   :  { %v140_v10 = vsel %vm138_vm2, %v139_v49, %v293_v48 }
  0x66   :  { %v137_v52 = vsel %vm135_vm3, %v291_v47, %v136_v51 }
  0x67   :  { %v141_v53 = vsel %vm134_vm4, %v137_v52, %v140_v10 }
  0x68   :  { %v142_v54 = vsel %vm131_vm5, nan, %v141_v53 }
  0x69   :  { %v247_v55 = vmax.f32 %v142_v54, 0.0  ;;  %v295_v56 = vpop.eup %294 }
  0x6a   :  { %v297_v57 = vpop.eup %296  ;;  %v243_v58 = vxor.u32 2147483648, %v295_v56 }
  0x6b   :  { %249 = vst [vmem:[#allocation7] sm:$0xff] %v247_v55  ;;  %v240_v59 = vxor.u32 2147483648, %v297_v57 }
  0x6c   :  { %v244_v60 = vsel %vm242_vm6, %v243_v58, %v297_v57 }
  0x6d   :  { %v241_v61 = vsel %vm239_vm7, %v295_v56, %v240_v59 }
  0x6e   :  { %v245_v6 = vsel %vm238_vm8, %v241_v61, %v244_v60 }
  0x6f   :  { %v246_v62 = vsel %vm235_vm9, nan, %v245_v6 }
  0x70   :  { %v248_v63 = vmax.f32 %v246_v62, 0.0 }
  0x72   :  { %250 = vst [vmem:[#allocation7 + $0x8] sm:$0xff] %v248_v63 }
  0x73   :  { %331 = shalt.err (!%p328_p12)
}
  0x74   :  { %s332_s30 = scalar_lea.hbm %s477_s3, 256 }
  0x75   :  { %p333_p13 = scmp.ne.s32.totalorder %s477_s3, %s332_s30  ;;  %p336_p0 = scmp.lt.u32.totalorder %s332_s30, %s477_s3 }
  0x77   :  { %p338_p1 = pnand %p336_p0, %p333_p13 }
  0x79   :  { %341 = shalt.err (!%p338_p1)
}
  0x7a   :  { %260 = dma.vmem_to_hbm [thread:$0]  %s258_s1, 256, %s477_s3, [#allocation6]  }
  0x7b   :  { %344 = dma.done.wait [#allocation6], 256  }
  0x7c   :  { %345 = vsyncadd [#allocation6], 4294967040 }
  0x7d   :  { %264 = vsyncpa [#allocation5], 1 }
  0x7e   :  { %265 = vsyncpa [#allocation6], 1 }

</bundles_post_ra>
